<compile_context>
chip_gen: v6e
topology: v6e:2x2x1
jax: 0.10.0
libtpu: 0.0.40
codegen_flags: <defaults>
</compile_context>

<pallas_src>
import functools

import jax
import jax.numpy as jnp
from jax import lax
from jax.experimental import pallas as pl
from jax.experimental.pallas import tpu as pltpu

HANDLE_Z = 0.0659999996   # third component of the handle_middle buffer
EPS = 1e-6
_LANE = 128
_DEFAULT_BLOCK_N = 2048   # lanes per grid step (multiple of 128); keeps vreg
                          # pressure moderate while amortizing per-step cost.


def _round_up(x, m):
    return ((x + m - 1) // m) * m


def _approach_angle_cos_sum_kernel(packed_ref, out_ref):
    """Per-block partial sum of cosine similarities.

    packed_ref : (6, block_n) f32, coordinate-major, lane-dense in batch.
                   rows 0..2 = T[:, :3, 2].T              (approach column c2)
                   rows 3..5 = (points - T[:, :3, 3]).T   (d = pts - start)
    out_ref    : (8, 128) f32; the block's partial sum broadcast over the tile
                 (read back as out[0, 0]).  Zero-padded batch lanes give
                 cos == 0 exactly, so they contribute nothing.
    """
    c2 = packed_ref[0:3, :]                 # (3, n)
    d = packed_ref[3:6, :]                  # (3, n)

    z = jnp.float32(HANDLE_Z)
    direction = z * c2                      # handle_middle - start = z * c2
    connected = d - direction               # pts - handle_middle = d - z*c2

    # Dot products / squared norms: elementwise products + sublane reduce.
    w12 = jnp.sum(direction * connected, axis=0, keepdims=True)   # (1, n)
    w1 = jnp.sum(direction * direction, axis=0, keepdims=True)    # (1, n)
    w2 = jnp.sum(connected * connected, axis=0, keepdims=True)    # (1, n)

    # cos = w12 / sqrt(max(w1*w2, eps^2))  -> EUP rsqrt + VPU multiply.
    inv_denom = lax.rsqrt(jnp.maximum(w1 * w2, jnp.float32(EPS * EPS)))
    cos = w12 * inv_denom                                          # (1, n)

    partial = jnp.sum(cos, axis=-1, keepdims=True)                 # (1, 1)
    out_ref[...] = jnp.broadcast_to(partial, out_ref.shape)


@functools.partial(jax.jit, static_argnames=("block_n",))
def approach_angle_loss(predict_T, selected_points, *, block_n=_DEFAULT_BLOCK_N):
    """Pallas implementation of ApproachAngleLoss.forward."""
    T = predict_T.astype(jnp.float32)
    pts = selected_points.reshape(-1, 3).astype(jnp.float32)
    assert T.shape[1:] == (4, 4)
    b = T.shape[0]
    assert pts.shape[0] == b

    # Single fused repack: (6, B) coordinate-major, lane-dense in batch.
    c2 = T[:, :3, 2]                               # (B, 3)
    d = pts - T[:, :3, 3]                          # (B, 3)
    packed = jnp.concatenate([c2, d], axis=1).T    # (6, B)

    # Lane-block the batch axis (blocks are multiples of 128 lanes).
    bn = max(_LANE, min(block_n, _round_up(b, _LANE)))
    b_pad = _round_up(b, bn)
    num_blocks = b_pad // bn
    if b_pad != b:
        packed = jnp.pad(packed, ((0, 0), (0, b_pad - b)))

    out = pl.pallas_call(
        _approach_angle_cos_sum_kernel,
        out_shape=jax.ShapeDtypeStruct((num_blocks * 8, _LANE), jnp.float32),
        grid=(num_blocks,),
        in_specs=[pl.BlockSpec((6, bn), lambda i: (0, i))],
        out_specs=pl.BlockSpec((8, _LANE), lambda i: (i, 0)),
        compiler_params=pltpu.CompilerParams(
            dimension_semantics=("parallel",)),
    )(packed)

    # One partial per block lives at [block, 0, 0]; finish the mean outside.
    cos_sum = jnp.sum(out.reshape(num_blocks, 8, _LANE)[:, 0, 0])
    return jnp.float32(1.0) - cos_sum / jnp.float32(b)


def _reference(predict_T, selected_points):
    """Pure-JAX reference mirroring the PyTorch module (for sanity check)."""
    h = jnp.array([0.0, 0.0, HANDLE_Z, 1.0], dtype=jnp.float32)
    T = predict_T.astype(jnp.float32)
    hm = jnp.einsum("bij,j->bi", T, h)[:, :3]
    start = T[:, :3, 3]
    direction = hm - start
    connected = selected_points.reshape(-1, 3).astype(jnp.float32) - hm
    w12 = jnp.sum(direction * connected, axis=-1)
    w1 = jnp.sum(direction * direction, axis=-1)
    w2 = jnp.sum(connected * connected, axis=-1)
    cos = w12 / jnp.sqrt(jnp.maximum(w1 * w2, EPS * EPS))
    return jnp.mean(1.0 - cos)


if __name__ == "__main__":
    key = jax.random.PRNGKey(0)
    k1, k2 = jax.random.split(key)

    B = 8
    # Deterministic synthetic inputs: (B, 4, 4) "transforms" and (B, 3) points.
    predict_T = jax.random.normal(k1, (B, 4, 4), dtype=jnp.float32)
    selected_points = jax.random.normal(k2, (B, 3), dtype=jnp.float32)

    loss = approach_angle_loss(predict_T, selected_points)
    loss = jax.block_until_ready(loss)

    ref = _reference(predict_T, selected_points)
    assert jnp.allclose(loss, ref, atol=1e-5, rtol=1e-5), (loss, ref)

    print("KERNEL_OK")
</pallas_src>

<mosaic_0001>
module attributes {stable_mosaic.version = 11 : i64} {
  func.func @_approach_angle_cos_sum_kernel(%arg0: i32, %arg1: memref<6x128xf32, #tpu.memory_space<vmem>>, %arg2: memref<8x128xf32, #tpu.memory_space<vmem>>) attributes {dimension_semantics = [#tpu.dimension_semantics<parallel>], iteration_bounds = array<i64: 1>, scalar_prefetch = 0 : i64, scratch_operands = 0 : i64, tpu.core_type = #tpu.core_type<tc>, window_params = [{transform_indices = @transform_0, window_bounds = array<i64: 6, 128>}, {transform_indices = @transform_1, window_bounds = array<i64: 8, 128>}]} {
    %c0 = arith.constant 0 : index
    %c0_0 = arith.constant 0 : index
    %0 = vector.load %arg1[%c0, %c0_0] : memref<6x128xf32, #tpu.memory_space<vmem>>, vector<3x128xf32>
    %c3 = arith.constant 3 : index
    %c0_1 = arith.constant 0 : index
    %1 = vector.load %arg1[%c3, %c0_1] : memref<6x128xf32, #tpu.memory_space<vmem>>, vector<3x128xf32>
    %cst = arith.constant 6.600000e-02 : f32
    %2 = vector.broadcast %cst : f32 to vector<3x128xf32>
    %3 = arith.mulf %2, %0 : vector<3x128xf32>
    %4 = arith.subf %1, %3 : vector<3x128xf32>
    %5 = arith.mulf %3, %4 : vector<3x128xf32>
    %cst_2 = arith.constant dense<0.000000e+00> : vector<128xf32>
    %6 = vector.multi_reduction <add>, %5, %cst_2 [0] : vector<3x128xf32> to vector<128xf32>
    %7 = vector.shape_cast %6 : vector<128xf32> to vector<1x128xf32>
    %8 = arith.mulf %3, %3 : vector<3x128xf32>
    %cst_3 = arith.constant dense<0.000000e+00> : vector<128xf32>
    %9 = vector.multi_reduction <add>, %8, %cst_3 [0] : vector<3x128xf32> to vector<128xf32>
    %10 = vector.shape_cast %9 : vector<128xf32> to vector<1x128xf32>
    %11 = arith.mulf %4, %4 : vector<3x128xf32>
    %cst_4 = arith.constant dense<0.000000e+00> : vector<128xf32>
    %12 = vector.multi_reduction <add>, %11, %cst_4 [0] : vector<3x128xf32> to vector<128xf32>
    %13 = vector.shape_cast %12 : vector<128xf32> to vector<1x128xf32>
    %14 = arith.mulf %10, %13 : vector<1x128xf32>
    %cst_5 = arith.constant 9.99999996E-13 : f32
    %15 = vector.broadcast %cst_5 : f32 to vector<1x128xf32>
    %16 = arith.maximumf %14, %15 : vector<1x128xf32>
    %17 = math.rsqrt %16 : vector<1x128xf32>
    %18 = arith.mulf %7, %17 : vector<1x128xf32>
    %cst_6 = arith.constant dense<0.000000e+00> : vector<1xf32>
    %19 = vector.multi_reduction <add>, %18, %cst_6 [1] : vector<1x128xf32> to vector<1xf32>
    %20 = vector.shape_cast %19 : vector<1xf32> to vector<1x1xf32>
    %21 = vector.shape_cast %20 : vector<1x1xf32> to vector<1x1xf32>
    %22 = vector.broadcast %21 : vector<1x1xf32> to vector<8x128xf32>
    %c0_7 = arith.constant 0 : index
    %c0_8 = arith.constant 0 : index
    %23 = vector.load %arg2[%c0_7, %c0_8] : memref<8x128xf32, #tpu.memory_space<vmem>>, vector<8x128xf32>
    tpu.vector_store %arg2[%c0_7, %c0_8], %22 {strides = array<i32>} : memref<8x128xf32, #tpu.memory_space<vmem>>, vector<8x128xf32>,
    return
  }
  func.func @transform_0(%arg0: i32) -> (i32, i32) {
    %c0_i32 = arith.constant 0 : i32
    %c0_i32_0 = arith.constant 0 : i32
    return %c0_i32, %arg0 : i32, i32
  }
  func.func @transform_1(%arg0: i32) -> (i32, i32) {
    %c0_i32 = arith.constant 0 : i32
    %c0_i32_0 = arith.constant 0 : i32
    return %arg0, %c0_i32 : i32, i32
  }
}

</mosaic_0001>

<bundles_post_ra>
// kernel: approach_angle_loss.1
= control target key start
LH: loop header
LB: loop body
LE: loop exit
PB: predicated region body
PF: predicated region fallthrough
CT: control target
= control target key end

     0   :  { %vm13_vm0 = vcmask 1042432   ;;  %s69_s0 = inlined_call_operand.vmem [shape: f32[6,128], index: 0, kind: input, shape index: {}]   ;;  %s70_s1 = inlined_call_operand.vmem [shape: f32[8,128], index: 1, kind: output, shape index: {}]  }
   0x1   :  { %v8_v0 = vld [vmem:[%s69_s0] sm:$0x7]  ;;  %v9_v1 = vld [vmem:[%s69_s0 + $0x3] sm:$0x7] }
   0x2   :  { %v10_v2 = vmul.f32 0.066, %v8_v0 }
   0x4   :  { %v11_v3 = vsub.f32 %v9_v1, %v10_v2  ;;  %v21_v4 = vmul.f32 %v10_v2, %v10_v2 }
   0x6   :  { %v22_v5 = vsel %vm13_vm0, %v21_v4, 0.0  ;;  %v29_v6 = vmul.f32 %v11_v3, %v11_v3  ;;  %v12_v8 = vmul.f32 %v11_v3, %v10_v2 }
   0x7   :  { %v23_v7 = vrot.slane %v22_v5, 4 }
   0x8   :  { %v30_v9 = vsel %vm13_vm0, %v29_v6, 0.0  ;;  %v14_v14 = vsel %vm13_vm0, %v12_v8, 0.0 }
   0x9   :  { %v24_v10 = vadd.f32 %v23_v7, %v22_v5  ;;  %v31_v11 = vrot.slane %v30_v9, 4  ;;  %v15_v17 = vrot.slane %v14_v14, 4 }
   0xb   :  { %v25_v12 = vrot.slane %v24_v10, 2  ;;  %v32_v13 = vadd.f32 %v31_v11, %v30_v9  ;;  %v16_v22 = vadd.f32 %v15_v17, %v14_v14 }
   0xd   :  { %v26_v15 = vadd.f32 %v25_v12, %v24_v10  ;;  %v33_v16 = vrot.slane %v32_v13, 2  ;;  %v17_v25 = vrot.slane %v16_v22, 2 }
   0xf   :  { %v27_v18 = vrot.slane %v26_v15, 1  ;;  %v34_v19 = vadd.f32 %v33_v16, %v32_v13  ;;  %v18_v27 = vadd.f32 %v17_v25, %v16_v22 }
  0x11   :  { %v28_v20 = vadd.f32 %v27_v18, %v26_v15  ;;  %v35_v21 = vrot.slane %v34_v19, 1  ;;  %v19_v28 = vrot.slane %v18_v27, 1 }
  0x13   :  { %v36_v23 = vadd.f32 %v35_v21, %v34_v19  ;;  %v20_v29 = vadd.f32 %v19_v28, %v18_v27 }
  0x15   :  { %v37_v24 = vmul.f32 %v36_v23, %v28_v20 }
  0x17   :  { %v38_v26 = vmax.f32 %v37_v24, 1e-12 }
  0x19   :  { %48 = vrsqrt.f32 %v38_v26 }
  0x26   :  { %v49_v30 = vpop.eup %48 }
  0x27   :  { %v40_v31 = vmul.f32 %v49_v30, %v20_v29 }
  0x29   :  { %41 = vadd.xlane.f32.xlu0 %v40_v31 }
  0xb2   :  { %v42_v32 = vpop.xlane.xlu0 %41 }
  0xb3   :  { %43 = vst [vmem:[%s70_s1] sm:$0xff] %v42_v32 }

</bundles_post_ra>
